<compile_context>
chip_gen: v5e
topology: v5e:2x2
jax: 0.10.0
libtpu: 0.0.40
codegen_flags: <defaults>
</compile_context>

<pallas_src>
import math

import numpy as np
import jax
import jax.numpy as jnp
from jax.experimental import pallas as pl
from jax.experimental.pallas import tpu as pltpu


N_LAYERS = 10  # 8 encoder/decoder layers + 2 MLP layers per view


def _round_up(x, m):
    return ((x + m - 1) // m) * m


# ----------------------------------------------------------------------------
# Fused kernel: one grid step == one view (specific + shared branches + MLP).
# ----------------------------------------------------------------------------
def _fused_view_kernel(x_ref, w_ref, b_ref, em_ref, rec_ref, mlp_ref):
    """x_ref:(Bp,D)  w_ref:(10,D,D)  b_ref:(10,1,D)  outputs:(Bp,D) each."""

    def layer(h, i):
        return jnp.dot(h, w_ref[i], preferred_element_type=jnp.float32) + b_ref[i]

    h = x_ref[...]
    # encoder l1..l4 (tanh); specific lanes [0,u), shared lanes [u,2u), rest 0.
    for i in range(4):
        h = jnp.tanh(layer(h, i))
    em_ref[...] = h                               # [spec_em | shared_em | 0-pad]
    # decoder l3_, l2_, l1_ (tanh)
    d = h
    for i in range(4, 7):
        d = jnp.tanh(layer(d, i))
    # reconstruction layer (sigmoid)
    rec_ref[...] = jax.nn.sigmoid(layer(d, 7))
    # 2-layer tanh MLP on the shared embedding; mlp1 weight rows select the
    # shared-embedding lanes of the concatenated layer-4 activation.
    m = jnp.tanh(layer(h, 8))
    mlp_ref[...] = jnp.tanh(layer(m, 9))


# ----------------------------------------------------------------------------
# Wrapper: builds the single fused pallas_call and the un-packing slices.
# ----------------------------------------------------------------------------
def make_forward(view_size, n_units_1, n_units_2, mlp_size, batch):
    dmax = _round_up(
        max([2 * v for v in view_size]
            + [2 * u for u in (list(n_units_1) + list(n_units_2))]
            + list(mlp_size)),
        128)
    b_pad = _round_up(batch, 8)

    vec_spec = pl.BlockSpec((None, b_pad, dmax), lambda v: (v, 0, 0))
    out_sds = jax.ShapeDtypeStruct((2, b_pad, dmax), jnp.float32)

    call = pl.pallas_call(
        _fused_view_kernel,
        out_shape=(out_sds, out_sds, out_sds),
        grid=(2,),
        in_specs=[
            vec_spec,
            pl.BlockSpec((None, N_LAYERS, dmax, dmax), lambda v: (v, 0, 0, 0)),
            pl.BlockSpec((None, N_LAYERS, 1, dmax), lambda v: (v, 0, 0, 0)),
        ],
        out_specs=(vec_spec, vec_spec, vec_spec),
        compiler_params=pltpu.CompilerParams(
            dimension_semantics=("parallel",)),   # 2 views -> 2 TCs on v7x
    )

    u1_3, u2_3 = n_units_1[3], n_units_2[3]
    v1, v2 = view_size
    m_out = mlp_size[1]

    @jax.jit
    def forward(view1_input, view2_input, w_all, b_all):
        B = view1_input.shape[0]
        x_all = jnp.zeros((2, b_pad, dmax), jnp.float32)
        x_all = x_all.at[0, :B, :v1].set(view1_input)
        x_all = x_all.at[1, :B, :v2].set(view2_input)
        em, rec, mlp = call(x_all, w_all, b_all)
        return (
            em[0, :B, 0:u1_3],   em[0, :B, u1_3:2 * u1_3],
            em[1, :B, 0:u2_3],   em[1, :B, u2_3:2 * u2_3],
            rec[0, :B, 0:v1],    rec[0, :B, v1:2 * v1],
            rec[1, :B, 0:v2],    rec[1, :B, v2:2 * v2],
            mlp[0, :B, 0:m_out], mlp[1, :B, 0:m_out],
        )

    return forward, dmax


# ----------------------------------------------------------------------------
# Parameter construction (kaiming-normal weights like the module's __init__;
# JAX RNG, so not bit-identical to torch RNG but same distribution).
# ----------------------------------------------------------------------------
def _init_linear(key, in_dim, out_dim):
    kw, kb = jax.random.split(key)
    std = math.sqrt(2.0 / in_dim)           # kaiming_normal_ defaults (gain sqrt(2))
    w = jax.random.normal(kw, (in_dim, out_dim), jnp.float32) * std
    bound = 1.0 / math.sqrt(in_dim)         # default nn.Linear bias init (untouched)
    b = jax.random.uniform(kb, (1, out_dim), jnp.float32, -bound, bound)
    return w, b


def _init_branch(key, view_sz, units):
    dims = [(view_sz, units[0]), (units[0], units[1]), (units[1], units[2]),
            (units[2], units[3]), (units[3], units[2]), (units[2], units[1]),
            (units[1], units[0]), (units[0], view_sz)]
    keys = jax.random.split(key, len(dims))
    ws, bs = [], []
    for k, (din, dout) in zip(keys, dims):
        w, b = _init_linear(k, din, dout)
        ws.append(w)
        bs.append(b)
    return ws, bs


def init_params(key, view_size, n_units_1, n_units_2, mlp_size):
    k = jax.random.split(key, 8)
    params = {
        "specific1": _init_branch(k[0], view_size[0], n_units_1),
        "shared1":   _init_branch(k[1], view_size[0], n_units_1),
        "specific2": _init_branch(k[2], view_size[1], n_units_2),
        "shared2":   _init_branch(k[3], view_size[1], n_units_2),
    }
    w1, b1 = _init_linear(k[4], n_units_1[3], mlp_size[0])
    w2, b2 = _init_linear(k[5], mlp_size[0], mlp_size[1])
    params["view1_mlp"] = ([w1, w2], [b1, b2])
    w1, b1 = _init_linear(k[6], n_units_2[3], mlp_size[0])
    w2, b2 = _init_linear(k[7], mlp_size[0], mlp_size[1])
    params["view2_mlp"] = ([w1, w2], [b1, b2])
    return params


# ----------------------------------------------------------------------------
# Pack one view's 18 linears into a (10, dmax, dmax) weight slab + biases.
#   layer 1: spec cols [0,u0), shared cols [u0,2u0), both read raw-input rows.
#   layers 2..8: block-diagonal (spec top-left, shared offset blocks).
#   layer 9 (mlp1): rows placed at the shared-embedding lane offset [u3,2u3).
#   layer 10 (mlp2): plain.
# Zero padding keeps the two branches independent and padded lanes at 0.
# ----------------------------------------------------------------------------
def _pack_view(spec_branch, shared_branch, mlp_branch, view_sz, units,
               mlp_size, dmax):
    W = np.zeros((N_LAYERS, dmax, dmax), np.float32)
    Bv = np.zeros((N_LAYERS, 1, dmax), np.float32)
    ws_s, bs_s = spec_branch
    ws_h, bs_h = shared_branch
    mlp_w, mlp_b = mlp_branch

    io = [(view_sz, units[0]), (units[0], units[1]), (units[1], units[2]),
          (units[2], units[3]), (units[3], units[2]), (units[2], units[1]),
          (units[1], units[0]), (units[0], view_sz)]
    for li, (din, dout) in enumerate(io):
        W[li, 0:din, 0:dout] = np.asarray(ws_s[li])
        Bv[li, 0, 0:dout] = np.asarray(bs_s[li]).reshape(-1)
        row0 = 0 if li == 0 else din          # layer 1: both branches read x
        W[li, row0:row0 + din, dout:2 * dout] = np.asarray(ws_h[li])
        Bv[li, 0, dout:2 * dout] = np.asarray(bs_h[li]).reshape(-1)

    u3 = units[3]
    m0, m1 = mlp_size
    W[8, u3:2 * u3, 0:m0] = np.asarray(mlp_w[0])   # selects shared-em lanes
    Bv[8, 0, 0:m0] = np.asarray(mlp_b[0]).reshape(-1)
    W[9, 0:m0, 0:m1] = np.asarray(mlp_w[1])
    Bv[9, 0, 0:m1] = np.asarray(mlp_b[1]).reshape(-1)
    return W, Bv


def pack_params(params, view_size, n_units_1, n_units_2, mlp_size, dmax):
    W1, B1 = _pack_view(params["specific1"], params["shared1"],
                        params["view1_mlp"], view_size[0], n_units_1,
                        mlp_size, dmax)
    W2, B2 = _pack_view(params["specific2"], params["shared2"],
                        params["view2_mlp"], view_size[1], n_units_2,
                        mlp_size, dmax)
    return jnp.asarray(np.stack([W1, W2])), jnp.asarray(np.stack([B1, B2]))


# ----------------------------------------------------------------------------
# Pure-JAX reference (mirrors SharedAndSpecificEmbedding.forward).
# ----------------------------------------------------------------------------
def _ref_encdec(x, ws, bs):
    hp = jax.lax.Precision.HIGHEST
    h = x
    for i in range(4):
        h = jnp.tanh(jnp.dot(h, ws[i], precision=hp) + bs[i])
    em = h
    for i in range(4, 7):
        h = jnp.tanh(jnp.dot(h, ws[i], precision=hp) + bs[i])
    rec = jax.nn.sigmoid(jnp.dot(h, ws[7], precision=hp) + bs[7])
    return em, rec


def reference_forward(params, x1, x2):
    hp = jax.lax.Precision.HIGHEST
    s1_em, s1_rec = _ref_encdec(x1, *params["specific1"])
    h1_em, h1_rec = _ref_encdec(x1, *params["shared1"])
    mw, mb = params["view1_mlp"]
    m1 = jnp.tanh(jnp.dot(jnp.tanh(jnp.dot(h1_em, mw[0], precision=hp) + mb[0]),
                          mw[1], precision=hp) + mb[1])
    s2_em, s2_rec = _ref_encdec(x2, *params["specific2"])
    h2_em, h2_rec = _ref_encdec(x2, *params["shared2"])
    mw, mb = params["view2_mlp"]
    m2 = jnp.tanh(jnp.dot(jnp.tanh(jnp.dot(h2_em, mw[0], precision=hp) + mb[0]),
                          mw[1], precision=hp) + mb[1])
    return (s1_em, h1_em, s2_em, h2_em, s1_rec, h1_rec, s2_rec, h2_rec, m1, m2)


# ----------------------------------------------------------------------------
# Main
# ----------------------------------------------------------------------------
if __name__ == "__main__":
    batch = 8
    view_size = [32, 48]            # feature dim of view1 / view2 inputs
    n_units_1 = [64, 48, 32, 16]    # encoder widths for view 1
    n_units_2 = [56, 40, 32, 24]    # encoder widths for view 2
    mlp_size = [32, 16]

    key = jax.random.PRNGKey(0)
    k_params, k_v1, k_v2 = jax.random.split(key, 3)

    params = init_params(k_params, view_size, n_units_1, n_units_2, mlp_size)
    view1_input = jax.random.uniform(k_v1, (batch, view_size[0]), jnp.float32)
    view2_input = jax.random.uniform(k_v2, (batch, view_size[1]), jnp.float32)

    forward, dmax = make_forward(view_size, n_units_1, n_units_2, mlp_size, batch)
    w_all, b_all = pack_params(params, view_size, n_units_1, n_units_2,
                               mlp_size, dmax)

    outputs = jax.block_until_ready(forward(view1_input, view2_input, w_all, b_all))
    refs = jax.block_until_ready(reference_forward(params, view1_input, view2_input))

    expected_shapes = [
        (batch, n_units_1[3]), (batch, n_units_1[3]),
        (batch, n_units_2[3]), (batch, n_units_2[3]),
        (batch, view_size[0]), (batch, view_size[0]),
        (batch, view_size[1]), (batch, view_size[1]),
        (batch, mlp_size[1]), (batch, mlp_size[1]),
    ]
    for out, ref, shp in zip(outputs, refs, expected_shapes):
        assert out.shape == shp, (out.shape, shp)
        assert bool(jnp.all(jnp.isfinite(out)))
        np.testing.assert_allclose(np.asarray(out), np.asarray(ref),
                                   rtol=2e-2, atol=2e-2)

    print("KERNEL_OK")
</pallas_src>

<mosaic_0001>
module attributes {stable_mosaic.version = 11 : i64} {
  func.func @_fused_view_kernel(%arg0: i32, %arg1: memref<1x8x128xf32, #tpu.memory_space<vmem>>, %arg2: memref<1x10x128x128xf32, #tpu.memory_space<vmem>>, %arg3: memref<1x10x1x128xf32, #tpu.memory_space<vmem>>, %arg4: memref<1x8x128xf32, #tpu.memory_space<vmem>>, %arg5: memref<1x8x128xf32, #tpu.memory_space<vmem>>, %arg6: memref<1x8x128xf32, #tpu.memory_space<vmem>>) attributes {dimension_semantics = [#tpu.dimension_semantics<parallel>], iteration_bounds = array<i64: 2>, scalar_prefetch = 0 : i64, scratch_operands = 0 : i64, tpu.core_type = #tpu.core_type<tc>, window_params = [{transform_indices = @transform_0, window_bounds = array<i64: 1, 8, 128>}, {transform_indices = @transform_1, window_bounds = array<i64: 1, 10, 128, 128>}, {transform_indices = @transform_2, window_bounds = array<i64: 1, 10, 1, 128>}, {transform_indices = @transform_3, window_bounds = array<i64: 1, 8, 128>}, {transform_indices = @transform_4, window_bounds = array<i64: 1, 8, 128>}, {transform_indices = @transform_5, window_bounds = array<i64: 1, 8, 128>}]} {
    %c0 = arith.constant 0 : index
    %c0_0 = arith.constant 0 : index
    %c0_1 = arith.constant 0 : index
    %0 = vector.load %arg1[%c0, %c0_0, %c0_1] : memref<1x8x128xf32, #tpu.memory_space<vmem>>, vector<1x8x128xf32>
    %1 = vector.shape_cast %0 : vector<1x8x128xf32> to vector<8x128xf32>
    %c0_2 = arith.constant 0 : index
    %c0_3 = arith.constant 0 : index
    %c0_4 = arith.constant 0 : index
    %c0_5 = arith.constant 0 : index
    %2 = vector.load %arg2[%c0_2, %c0_3, %c0_4, %c0_5] : memref<1x10x128x128xf32, #tpu.memory_space<vmem>>, vector<1x1x128x128xf32>
    %3 = vector.shape_cast %2 : vector<1x1x128x128xf32> to vector<128x128xf32>
    %cst = arith.constant dense<0.000000e+00> : vector<8x128xf32>
    %4 = tpu.matmul %1, %3, %cst {dimension_numbers = #tpu.dot_dimension_numbers<[1], [0], [0], [1], [0, 0, 1, 1], [], []>} : vector<8x128xf32>, vector<128x128xf32>, vector<8x128xf32> -> vector<8x128xf32>
    %c0_6 = arith.constant 0 : index
    %c0_7 = arith.constant 0 : index
    %c0_8 = arith.constant 0 : index
    %c0_9 = arith.constant 0 : index
    %5 = vector.load %arg3[%c0_6, %c0_7, %c0_8, %c0_9] : memref<1x10x1x128xf32, #tpu.memory_space<vmem>>, vector<1x1x1x128xf32>
    %6 = vector.shape_cast %5 : vector<1x1x1x128xf32> to vector<1x128xf32>
    %7 = vector.broadcast %6 : vector<1x128xf32> to vector<8x128xf32>
    %8 = arith.addf %4, %7 : vector<8x128xf32>
    %9 = math.tanh %8 : vector<8x128xf32>
    %c0_10 = arith.constant 0 : index
    %c1 = arith.constant 1 : index
    %c0_11 = arith.constant 0 : index
    %c0_12 = arith.constant 0 : index
    %10 = vector.load %arg2[%c0_10, %c1, %c0_11, %c0_12] : memref<1x10x128x128xf32, #tpu.memory_space<vmem>>, vector<1x1x128x128xf32>
    %11 = vector.shape_cast %10 : vector<1x1x128x128xf32> to vector<128x128xf32>
    %cst_13 = arith.constant dense<0.000000e+00> : vector<8x128xf32>
    %12 = tpu.matmul %9, %11, %cst_13 {dimension_numbers = #tpu.dot_dimension_numbers<[1], [0], [0], [1], [0, 0, 1, 1], [], []>} : vector<8x128xf32>, vector<128x128xf32>, vector<8x128xf32> -> vector<8x128xf32>
    %c0_14 = arith.constant 0 : index
    %c1_15 = arith.constant 1 : index
    %c0_16 = arith.constant 0 : index
    %c0_17 = arith.constant 0 : index
    %13 = vector.load %arg3[%c0_14, %c1_15, %c0_16, %c0_17] : memref<1x10x1x128xf32, #tpu.memory_space<vmem>>, vector<1x1x1x128xf32>
    %14 = vector.shape_cast %13 : vector<1x1x1x128xf32> to vector<1x128xf32>
    %15 = vector.broadcast %14 : vector<1x128xf32> to vector<8x128xf32>
    %16 = arith.addf %12, %15 : vector<8x128xf32>
    %17 = math.tanh %16 : vector<8x128xf32>
    %c0_18 = arith.constant 0 : index
    %c2 = arith.constant 2 : index
    %c0_19 = arith.constant 0 : index
    %c0_20 = arith.constant 0 : index
    %18 = vector.load %arg2[%c0_18, %c2, %c0_19, %c0_20] : memref<1x10x128x128xf32, #tpu.memory_space<vmem>>, vector<1x1x128x128xf32>
    %19 = vector.shape_cast %18 : vector<1x1x128x128xf32> to vector<128x128xf32>
    %cst_21 = arith.constant dense<0.000000e+00> : vector<8x128xf32>
    %20 = tpu.matmul %17, %19, %cst_21 {dimension_numbers = #tpu.dot_dimension_numbers<[1], [0], [0], [1], [0, 0, 1, 1], [], []>} : vector<8x128xf32>, vector<128x128xf32>, vector<8x128xf32> -> vector<8x128xf32>
    %c0_22 = arith.constant 0 : index
    %c2_23 = arith.constant 2 : index
    %c0_24 = arith.constant 0 : index
    %c0_25 = arith.constant 0 : index
    %21 = vector.load %arg3[%c0_22, %c2_23, %c0_24, %c0_25] : memref<1x10x1x128xf32, #tpu.memory_space<vmem>>, vector<1x1x1x128xf32>
    %22 = vector.shape_cast %21 : vector<1x1x1x128xf32> to vector<1x128xf32>
    %23 = vector.broadcast %22 : vector<1x128xf32> to vector<8x128xf32>
    %24 = arith.addf %20, %23 : vector<8x128xf32>
    %25 = math.tanh %24 : vector<8x128xf32>
    %c0_26 = arith.constant 0 : index
    %c3 = arith.constant 3 : index
    %c0_27 = arith.constant 0 : index
    %c0_28 = arith.constant 0 : index
    %26 = vector.load %arg2[%c0_26, %c3, %c0_27, %c0_28] : memref<1x10x128x128xf32, #tpu.memory_space<vmem>>, vector<1x1x128x128xf32>
    %27 = vector.shape_cast %26 : vector<1x1x128x128xf32> to vector<128x128xf32>
    %cst_29 = arith.constant dense<0.000000e+00> : vector<8x128xf32>
    %28 = tpu.matmul %25, %27, %cst_29 {dimension_numbers = #tpu.dot_dimension_numbers<[1], [0], [0], [1], [0, 0, 1, 1], [], []>} : vector<8x128xf32>, vector<128x128xf32>, vector<8x128xf32> -> vector<8x128xf32>
    %c0_30 = arith.constant 0 : index
    %c3_31 = arith.constant 3 : index
    %c0_32 = arith.constant 0 : index
    %c0_33 = arith.constant 0 : index
    %29 = vector.load %arg3[%c0_30, %c3_31, %c0_32, %c0_33] : memref<1x10x1x128xf32, #tpu.memory_space<vmem>>, vector<1x1x1x128xf32>
    %30 = vector.shape_cast %29 : vector<1x1x1x128xf32> to vector<1x128xf32>
    %31 = vector.broadcast %30 : vector<1x128xf32> to vector<8x128xf32>
    %32 = arith.addf %28, %31 : vector<8x128xf32>
    %33 = math.tanh %32 : vector<8x128xf32>
    %c0_34 = arith.constant 0 : index
    %c0_35 = arith.constant 0 : index
    %c0_36 = arith.constant 0 : index
    %34 = vector.load %arg4[%c0_34, %c0_35, %c0_36] : memref<1x8x128xf32, #tpu.memory_space<vmem>>, vector<1x8x128xf32>
    %35 = vector.shape_cast %34 : vector<1x8x128xf32> to vector<8x128xf32>
    %36 = vector.shape_cast %33 : vector<8x128xf32> to vector<1x8x128xf32>
    tpu.vector_store %arg4[%c0_34, %c0_35, %c0_36], %36 {strides = array<i32>} : memref<1x8x128xf32, #tpu.memory_space<vmem>>, vector<1x8x128xf32>,
    %c0_37 = arith.constant 0 : index
    %c4 = arith.constant 4 : index
    %c0_38 = arith.constant 0 : index
    %c0_39 = arith.constant 0 : index
    %37 = vector.load %arg2[%c0_37, %c4, %c0_38, %c0_39] : memref<1x10x128x128xf32, #tpu.memory_space<vmem>>, vector<1x1x128x128xf32>
    %38 = vector.shape_cast %37 : vector<1x1x128x128xf32> to vector<128x128xf32>
    %cst_40 = arith.constant dense<0.000000e+00> : vector<8x128xf32>
    %39 = tpu.matmul %33, %38, %cst_40 {dimension_numbers = #tpu.dot_dimension_numbers<[1], [0], [0], [1], [0, 0, 1, 1], [], []>} : vector<8x128xf32>, vector<128x128xf32>, vector<8x128xf32> -> vector<8x128xf32>
    %c0_41 = arith.constant 0 : index
    %c4_42 = arith.constant 4 : index
    %c0_43 = arith.constant 0 : index
    %c0_44 = arith.constant 0 : index
    %40 = vector.load %arg3[%c0_41, %c4_42, %c0_43, %c0_44] : memref<1x10x1x128xf32, #tpu.memory_space<vmem>>, vector<1x1x1x128xf32>
    %41 = vector.shape_cast %40 : vector<1x1x1x128xf32> to vector<1x128xf32>
    %42 = vector.broadcast %41 : vector<1x128xf32> to vector<8x128xf32>
    %43 = arith.addf %39, %42 : vector<8x128xf32>
    %44 = math.tanh %43 : vector<8x128xf32>
    %c0_45 = arith.constant 0 : index
    %c5 = arith.constant 5 : index
    %c0_46 = arith.constant 0 : index
    %c0_47 = arith.constant 0 : index
    %45 = vector.load %arg2[%c0_45, %c5, %c0_46, %c0_47] : memref<1x10x128x128xf32, #tpu.memory_space<vmem>>, vector<1x1x128x128xf32>
    %46 = vector.shape_cast %45 : vector<1x1x128x128xf32> to vector<128x128xf32>
    %cst_48 = arith.constant dense<0.000000e+00> : vector<8x128xf32>
    %47 = tpu.matmul %44, %46, %cst_48 {dimension_numbers = #tpu.dot_dimension_numbers<[1], [0], [0], [1], [0, 0, 1, 1], [], []>} : vector<8x128xf32>, vector<128x128xf32>, vector<8x128xf32> -> vector<8x128xf32>
    %c0_49 = arith.constant 0 : index
    %c5_50 = arith.constant 5 : index
    %c0_51 = arith.constant 0 : index
    %c0_52 = arith.constant 0 : index
    %48 = vector.load %arg3[%c0_49, %c5_50, %c0_51, %c0_52] : memref<1x10x1x128xf32, #tpu.memory_space<vmem>>, vector<1x1x1x128xf32>
    %49 = vector.shape_cast %48 : vector<1x1x1x128xf32> to vector<1x128xf32>
    %50 = vector.broadcast %49 : vector<1x128xf32> to vector<8x128xf32>
    %51 = arith.addf %47, %50 : vector<8x128xf32>
    %52 = math.tanh %51 : vector<8x128xf32>
    %c0_53 = arith.constant 0 : index
    %c6 = arith.constant 6 : index
    %c0_54 = arith.constant 0 : index
    %c0_55 = arith.constant 0 : index
    %53 = vector.load %arg2[%c0_53, %c6, %c0_54, %c0_55] : memref<1x10x128x128xf32, #tpu.memory_space<vmem>>, vector<1x1x128x128xf32>
    %54 = vector.shape_cast %53 : vector<1x1x128x128xf32> to vector<128x128xf32>
    %cst_56 = arith.constant dense<0.000000e+00> : vector<8x128xf32>
    %55 = tpu.matmul %52, %54, %cst_56 {dimension_numbers = #tpu.dot_dimension_numbers<[1], [0], [0], [1], [0, 0, 1, 1], [], []>} : vector<8x128xf32>, vector<128x128xf32>, vector<8x128xf32> -> vector<8x128xf32>
    %c0_57 = arith.constant 0 : index
    %c6_58 = arith.constant 6 : index
    %c0_59 = arith.constant 0 : index
    %c0_60 = arith.constant 0 : index
    %56 = vector.load %arg3[%c0_57, %c6_58, %c0_59, %c0_60] : memref<1x10x1x128xf32, #tpu.memory_space<vmem>>, vector<1x1x1x128xf32>
    %57 = vector.shape_cast %56 : vector<1x1x1x128xf32> to vector<1x128xf32>
    %58 = vector.broadcast %57 : vector<1x128xf32> to vector<8x128xf32>
    %59 = arith.addf %55, %58 : vector<8x128xf32>
    %60 = math.tanh %59 : vector<8x128xf32>
    %c0_61 = arith.constant 0 : index
    %c7 = arith.constant 7 : index
    %c0_62 = arith.constant 0 : index
    %c0_63 = arith.constant 0 : index
    %61 = vector.load %arg2[%c0_61, %c7, %c0_62, %c0_63] : memref<1x10x128x128xf32, #tpu.memory_space<vmem>>, vector<1x1x128x128xf32>
    %62 = vector.shape_cast %61 : vector<1x1x128x128xf32> to vector<128x128xf32>
    %cst_64 = arith.constant dense<0.000000e+00> : vector<8x128xf32>
    %63 = tpu.matmul %60, %62, %cst_64 {dimension_numbers = #tpu.dot_dimension_numbers<[1], [0], [0], [1], [0, 0, 1, 1], [], []>} : vector<8x128xf32>, vector<128x128xf32>, vector<8x128xf32> -> vector<8x128xf32>
    %c0_65 = arith.constant 0 : index
    %c7_66 = arith.constant 7 : index
    %c0_67 = arith.constant 0 : index
    %c0_68 = arith.constant 0 : index
    %64 = vector.load %arg3[%c0_65, %c7_66, %c0_67, %c0_68] : memref<1x10x1x128xf32, #tpu.memory_space<vmem>>, vector<1x1x1x128xf32>
    %65 = vector.shape_cast %64 : vector<1x1x1x128xf32> to vector<1x128xf32>
    %66 = vector.broadcast %65 : vector<1x128xf32> to vector<8x128xf32>
    %67 = arith.addf %63, %66 : vector<8x128xf32>
    %68 = arith.negf %67 : vector<8x128xf32>
    %69 = math.exp %68 : vector<8x128xf32>
    %cst_69 = arith.constant 1.000000e+00 : f32
    %70 = vector.broadcast %cst_69 : f32 to vector<8x128xf32>
    %71 = arith.addf %70, %69 : vector<8x128xf32>
    %72 = arith.divf %70, %71 : vector<8x128xf32>
    %c0_70 = arith.constant 0 : index
    %c0_71 = arith.constant 0 : index
    %c0_72 = arith.constant 0 : index
    %73 = vector.load %arg5[%c0_70, %c0_71, %c0_72] : memref<1x8x128xf32, #tpu.memory_space<vmem>>, vector<1x8x128xf32>
    %74 = vector.shape_cast %73 : vector<1x8x128xf32> to vector<8x128xf32>
    %75 = vector.shape_cast %72 : vector<8x128xf32> to vector<1x8x128xf32>
    tpu.vector_store %arg5[%c0_70, %c0_71, %c0_72], %75 {strides = array<i32>} : memref<1x8x128xf32, #tpu.memory_space<vmem>>, vector<1x8x128xf32>,
    %c0_73 = arith.constant 0 : index
    %c8 = arith.constant 8 : index
    %c0_74 = arith.constant 0 : index
    %c0_75 = arith.constant 0 : index
    %76 = vector.load %arg2[%c0_73, %c8, %c0_74, %c0_75] : memref<1x10x128x128xf32, #tpu.memory_space<vmem>>, vector<1x1x128x128xf32>
    %77 = vector.shape_cast %76 : vector<1x1x128x128xf32> to vector<128x128xf32>
    %cst_76 = arith.constant dense<0.000000e+00> : vector<8x128xf32>
    %78 = tpu.matmul %33, %77, %cst_76 {dimension_numbers = #tpu.dot_dimension_numbers<[1], [0], [0], [1], [0, 0, 1, 1], [], []>} : vector<8x128xf32>, vector<128x128xf32>, vector<8x128xf32> -> vector<8x128xf32>
    %c0_77 = arith.constant 0 : index
    %c8_78 = arith.constant 8 : index
    %c0_79 = arith.constant 0 : index
    %c0_80 = arith.constant 0 : index
    %79 = vector.load %arg3[%c0_77, %c8_78, %c0_79, %c0_80] : memref<1x10x1x128xf32, #tpu.memory_space<vmem>>, vector<1x1x1x128xf32>
    %80 = vector.shape_cast %79 : vector<1x1x1x128xf32> to vector<1x128xf32>
    %81 = vector.broadcast %80 : vector<1x128xf32> to vector<8x128xf32>
    %82 = arith.addf %78, %81 : vector<8x128xf32>
    %83 = math.tanh %82 : vector<8x128xf32>
    %c0_81 = arith.constant 0 : index
    %c9 = arith.constant 9 : index
    %c0_82 = arith.constant 0 : index
    %c0_83 = arith.constant 0 : index
    %84 = vector.load %arg2[%c0_81, %c9, %c0_82, %c0_83] : memref<1x10x128x128xf32, #tpu.memory_space<vmem>>, vector<1x1x128x128xf32>
    %85 = vector.shape_cast %84 : vector<1x1x128x128xf32> to vector<128x128xf32>
    %cst_84 = arith.constant dense<0.000000e+00> : vector<8x128xf32>
    %86 = tpu.matmul %83, %85, %cst_84 {dimension_numbers = #tpu.dot_dimension_numbers<[1], [0], [0], [1], [0, 0, 1, 1], [], []>} : vector<8x128xf32>, vector<128x128xf32>, vector<8x128xf32> -> vector<8x128xf32>
    %c0_85 = arith.constant 0 : index
    %c9_86 = arith.constant 9 : index
    %c0_87 = arith.constant 0 : index
    %c0_88 = arith.constant 0 : index
    %87 = vector.load %arg3[%c0_85, %c9_86, %c0_87, %c0_88] : memref<1x10x1x128xf32, #tpu.memory_space<vmem>>, vector<1x1x1x128xf32>
    %88 = vector.shape_cast %87 : vector<1x1x1x128xf32> to vector<1x128xf32>
    %89 = vector.broadcast %88 : vector<1x128xf32> to vector<8x128xf32>
    %90 = arith.addf %86, %89 : vector<8x128xf32>
    %91 = math.tanh %90 : vector<8x128xf32>
    %c0_89 = arith.constant 0 : index
    %c0_90 = arith.constant 0 : index
    %c0_91 = arith.constant 0 : index
    %92 = vector.load %arg6[%c0_89, %c0_90, %c0_91] : memref<1x8x128xf32, #tpu.memory_space<vmem>>, vector<1x8x128xf32>
    %93 = vector.shape_cast %92 : vector<1x8x128xf32> to vector<8x128xf32>
    %94 = vector.shape_cast %91 : vector<8x128xf32> to vector<1x8x128xf32>
    tpu.vector_store %arg6[%c0_89, %c0_90, %c0_91], %94 {strides = array<i32>} : memref<1x8x128xf32, #tpu.memory_space<vmem>>, vector<1x8x128xf32>,
    return
  }
  func.func @transform_0(%arg0: i32) -> (i32, i32, i32) {
    %c0_i32 = arith.constant 0 : i32
    %c0_i32_0 = arith.constant 0 : i32
    %c0_i32_1 = arith.constant 0 : i32
    return %arg0, %c0_i32, %c0_i32_0 : i32, i32, i32
  }
  func.func @transform_1(%arg0: i32) -> (i32, i32, i32, i32) {
    %c0_i32 = arith.constant 0 : i32
    %c0_i32_0 = arith.constant 0 : i32
    %c0_i32_1 = arith.constant 0 : i32
    %c0_i32_2 = arith.constant 0 : i32
    return %arg0, %c0_i32, %c0_i32_0, %c0_i32_1 : i32, i32, i32, i32
  }
  func.func @transform_2(%arg0: i32) -> (i32, i32, i32, i32) {
    %c0_i32 = arith.constant 0 : i32
    %c0_i32_0 = arith.constant 0 : i32
    %c0_i32_1 = arith.constant 0 : i32
    %c0_i32_2 = arith.constant 0 : i32
    return %arg0, %c0_i32, %c0_i32_0, %c0_i32_1 : i32, i32, i32, i32
  }
  func.func @transform_3(%arg0: i32) -> (i32, i32, i32) {
    %c0_i32 = arith.constant 0 : i32
    %c0_i32_0 = arith.constant 0 : i32
    %c0_i32_1 = arith.constant 0 : i32
    return %arg0, %c0_i32, %c0_i32_0 : i32, i32, i32
  }
  func.func @transform_4(%arg0: i32) -> (i32, i32, i32) {
    %c0_i32 = arith.constant 0 : i32
    %c0_i32_0 = arith.constant 0 : i32
    %c0_i32_1 = arith.constant 0 : i32
    return %arg0, %c0_i32, %c0_i32_0 : i32, i32, i32
  }
  func.func @transform_5(%arg0: i32) -> (i32, i32, i32) {
    %c0_i32 = arith.constant 0 : i32
    %c0_i32_0 = arith.constant 0 : i32
    %c0_i32_1 = arith.constant 0 : i32
    return %arg0, %c0_i32, %c0_i32_0 : i32, i32, i32
  }
}

</mosaic_0001>

<bundles_post_ra>
// kernel: forward.1
= control target key start
LH: loop header
LB: loop body
LE: loop exit
PB: predicated region body
PF: predicated region fallthrough
CT: control target
= control target key end

     0   :  { %11 = vsyncpa [#allocation3], 0  ;;  %s1630_s0 = inlined_call_operand.vmem [shape: f32[2,8,128], index: 0, kind: input, shape index: {}]   ;;  %s1631_s1 = inlined_call_operand.hbm [shape: f32[2,10,128,128], index: 1, kind: input, shape index: {}]   ;;  %s1632_s2 = inlined_call_operand.hbm [shape: f32[2,10,1,128], index: 2, kind: input, shape index: {}]   ;;  %s1633_s3 = inlined_call_operand.vmem [shape: f32[2,8,128], index: 3, kind: output, shape index: {0}]   ;;  %s1634_s4 = inlined_call_operand.vmem [shape: f32[2,8,128], index: 4, kind: output, shape index: {1}]   ;;  %s1635_s5 = inlined_call_operand.vmem [shape: f32[2,8,128], index: 5, kind: output, shape index: {2}]  }
   0x1   :  { %13 = vsyncpa [#allocation3 + $0x1], 0 }
   0x2   :  { %14 = vsyncpa [#allocation5], 0 }
   0x3   :  { %16 = vsyncpa [#allocation5 + $0x1], 0  ;;  %s1321_s18 = smov 0   ;;  %s1323_s19 = smov 0  }
   0x4   :  { %s1325_s20 = smov 0   ;;  %s1327_s21 = smov 0  }
   0x5 LB: > { %s1340_s22 = sadd.s32 4294967295, %s1285_s21   ;;  %s1343_s23 = sadd.s32 1, %s1285_s21   ;;  %s1285_s21 = sphi %s1327_s21, %s1642_s21   ;;  %s1281_s20 = sphi %s1325_s20, %s1641_s20   ;;  %s1277_s19 = sphi %s1323_s19, %s1640_s19   ;;  %s1273_s18 = sphi %s1321_s18, %s1639_s18  }
   0x6   : > { %s52_s24 = ssub.s32 %s1285_s21, %s1343_s23  ;;  %s55_s25 = sadd.s32 1, %s1281_s20 }
   0x7   : > { %p53_p0 = scmp.eq.s32.totalorder %s52_s24, 0  ;;  %p62_p1 = scmp.ne.s32.totalorder %s1281_s20, %s1277_s19 }
   0x8   : > { %p63_p2 = scmp.eq.s32.totalorder %s1285_s21, 0  ;;  %p68_p3 = scmp.ne.s32.totalorder %s1277_s19, %s1273_s18 }
   0x9   : > { %s1353_s26 = scalar_select %p53_p0, %s1281_s20, %s55_s25  }
   0xa   : > { %p64_p4 = por %p63_p2, %p62_p1  ;;  %p69_p5 = scmp.eq.s32.totalorder %s1340_s22, 0 }
   0xb   : > { %p1118_p6 = scmp.lt.s32.totalorder %s1285_s21, 2  ;;  %s1362_s28 = sand.u32 1, %s1281_s20  }
   0xc   : > { %p1357_p7 = por %p69_p5, %p68_p3  ;;  %s1101_s29 = smul.u32 1280, %s1362_s28 }
   0xd   : > { %s1102_s30 = smul.u32 1280, %s1285_s21  ;;  %p1366_p8 = pnand %p1118_p6, %p64_p4 }
   0xe   : > { %s207_s10 = scalar_lea.vmem [#allocation2], %s1101_s29  ;;  %p940_p9 = scmp.ge.s32.totalorder %s1285_s21, 1 }
   0xf   : > { %s212_s9 = scalar_lea.hbm %s1631_s1, %s1102_s30  ;;  %s215_s11 = sshll.u32 %s207_s10, 4  ;;  %s216_s11 = int_to_ptr.vmem [resolvable:$true] %s215_s11 }
  0x10   : > { %s213_s12 = sshll.u32 %s212_s9, 4  ;;  %s204_s13 = scalar_lea.sflag [#allocation3], %s1362_s28  ;;  %s214_s12 = int_to_ptr.hbm [resolvable:$true] %s213_s12 }
  0x11   : > { %s1187_s14 = sshra.s32 %s214_s12, 4  ;;  %p1191_p11 = pneg %p1366_p8  ;;  %s1188_s14 = int_to_ptr.hbm [resolvable:$true] %s1187_s14 }
  0x12   : > { %s1189_s15 = scalar_lea.hbm %s1188_s14, 1280  ;;  %s1194_s18 = scalar_lea.hbm %s1631_s1, 2560 }
  0x13   : > { %p1190_p10 = scmp.ne.s32.totalorder %s1188_s14, %s1189_s15  ;;  %p1195_p0 = scmp.lt.s32.totalorder %s1188_s14, %s1631_s1 }
  0x14   : > { %p1196_p1 = scmp.lt.s32.totalorder %s1194_s18, %s1189_s15 }
  0x15   : > { %p1192_p12 = pnand %p1191_p11, %p1190_p10 }
  0x16   : > { %p1197_p2 = por %p1196_p1, %p1195_p0 }
  0x17   : > { %p1193_p13 = pneg %p1192_p12 }
  0x19   : > { %p1198_p3 = pnand %p1197_p2, %p1193_p13 }
  0x1b   : > { %1201 = shalt.err (!%p1198_p3)
}
  0x1c   : > { %s1287_s29 = smov 128   ;;  %s1288_s30 = smov 8  }
  0x1d   : > { %1114 = dma.hbm_to_vmem [thread:$0]  (!%p1366_p8), %s214_s12, 20480, %s216_s11, %s204_s13, %s1287_s29, %s1287_s29, %s1288_s30  }
  0x1e   : > { %p244_p4 = scmp.lt.s32.totalorder %s1285_s21, 3  ;;  %s1103_s7 = smul.u32 10, %s1362_s28 }
  0x1f   : > { %s1104_s9 = smul.u32 10, %s1285_s21  ;;  %s226_s24 = scalar_lea.sflag [#allocation5], %s1362_s28 }
  0x20   : > { %p1392_p5 = pnand %p940_p9, %p244_p4  ;;  %s229_s16 = scalar_lea.vmem [#allocation4], %s1103_s7 }
  0x21   : > { %s233_s15 = scalar_lea.hbm %s1632_s2, %s1104_s9  ;;  %s236_s17 = sshll.u32 %s229_s16, 4  ;;  %s237_s17 = int_to_ptr.vmem [resolvable:$true] %s236_s17 }
  0x22   : > { %s234_s18 = sshll.u32 %s233_s15, 4  ;;  %s1224_s25 = scalar_lea.hbm %s1632_s2, 20  ;;  %s235_s18 = int_to_ptr.hbm [resolvable:$true] %s234_s18 }
  0x23   : > { %s1217_s11 = sshra.s32 %s235_s18, 4  ;;  %s1218_s11 = int_to_ptr.hbm [resolvable:$true] %s1217_s11 }
  0x24   : > { %s1219_s12 = scalar_lea.hbm %s1218_s11, 10  ;;  %p1225_p12 = scmp.lt.s32.totalorder %s1218_s11, %s1632_s2 }
  0x25   : > { %p1220_p6 = scmp.ne.s32.totalorder %s1218_s11, %s1219_s12  ;;  %p1226_p13 = scmp.lt.s32.totalorder %s1224_s25, %s1219_s12 }
  0x27   : > { %p1222_p9 = pnand %p1220_p6, %p1191_p11  ;;  %p1227_p0 = por %p1226_p13, %p1225_p12 }
  0x29   : > { %p1223_p10 = pneg %p1222_p9 }
  0x2b   : > { %p1228_p1 = pnand %p1227_p0, %p1223_p10 }
  0x2d   : > { %1231 = shalt.err (!%p1228_p1)
}
  0x2e   : > { %s1289_s28 = smov 16   ;;  %s1290_s7 = smov 1  }
  0x2f   : > { %1117 = dma.hbm_to_vmem [thread:$0]  (!%p1366_p8), %s235_s18, 160, %s237_s17, %s226_s24, %s1289_s28, %s1289_s28, %s1290_s7  }
  0x30   : > { %248 = sbr.rel (%p1392_p5) target bundleno = 1216 (0x4c0), region = 32  ;;  %s250_s9 = sand.u32 (!%p1392_p5), 1, %s1277_s19  }
  0x31   : > { %s1105_s10 = smul.u32 (!%p1392_p5), 1280, %s250_s9  ;;  %s251_s14 = scalar_lea.sflag (!%p1392_p5), [#allocation3], %s250_s9 }
  0x33   : > { %s1415_s15 = scalar_lea.vmem (!%p1392_p5), [#allocation2], %s1105_s10 }
  0x35   : > { %1264 = dma.done.wait (%p1357_p7), %s251_s14, 20480  }
  0x36   : > { %1266 = vsyncadd (%p1357_p7), %s251_s14, 4294946816  ;;  %s1106_s16 = smul.u32 10, %s250_s9  ;;  %s261_s11 = scalar_lea.sflag [#allocation5], %s250_s9 }
  0x38   : > { %s1421_s6 = scalar_lea.vmem [#allocation4], %s1106_s16 }
  0x39   : > { %1268 = dma.done.wait (%p1357_p7), %s261_s11, 160  }
  0x3a   : > { %1270 = vsyncadd (%p1357_p7), %s261_s11, 4294967136  ;;  %v340_v0 = vld [vmem:[%s1415_s15 + $0x78] sm:$0xff]  ;;  %v339_v1 = vld [vmem:[%s1415_s15 + $0x70] sm:$0xff]  ;;  %p308_p7 = scmp.lt.s32.totalorder %s1340_s22, 1 }
  0x3b   : > { %345 = vmatpush.msra.mxu0 %v340_v0  ;;  %v338_v2 = vld [vmem:[%s1415_s15 + $0x68] sm:$0xff]  ;;  %v337_v3 = vld [vmem:[%s1415_s15 + $0x60] sm:$0xff]  ;;  %v960_v4 = vld [vmem:[%s1415_s15 + $0xf8] sm:$0xff] }
  0x3c   : > { %v336_v5 = vld [vmem:[%s1415_s15 + $0x58] sm:$0xff]  ;;  %388 = vmatpush.msra.mxu1 %v960_v4  ;;  %v959_v6 = vld [vmem:[%s1415_s15 + $0xf0] sm:$0xff]  ;;  %v958_v7 = vld [vmem:[%s1415_s15 + $0xe8] sm:$0xff]  ;;  %s1644_s22 = smov (!%p308_p7, %s1340_s22), 1 }
  0x3d   : > { %346 = vmatpush.msra.mxu0 %v339_v1  ;;  %v335_v8 = vld [vmem:[%s1415_s15 + $0x50] sm:$0xff]  ;;  %v334_v9 = vld [vmem:[%s1415_s15 + $0x48] sm:$0xff]  ;;  %v957_v10 = vld [vmem:[%s1415_s15 + $0xe0] sm:$0xff]  ;;  %s1452_s27 = sshll.u32 %s1644_s22, 3 }
  0x3e   : > { %389 = vmatpush.msra.mxu1 %v959_v6  ;;  %v956_v11 = vld [vmem:[%s1415_s15 + $0xd8] sm:$0xff]  ;;  %v333_v12 = vld [vmem:[%s1415_s15 + $0x40] sm:$0xff]  ;;  %v955_v13 = vld [vmem:[%s1415_s15 + $0xd0] sm:$0xff]  ;;  %s311_s18 = scalar_lea.vmem %s1630_s0, %s1452_s27  ;;  %s315_s12 = scalar_lea.vmem %s1633_s3, %s1452_s27 }
  0x3f   : > { %347 = vmatpush.msra.mxu0 %v338_v2  ;;  %v332_v14 = vld [vmem:[%s1415_s15 + $0x38] sm:$0xff]  ;;  %v954_v15 = vld [vmem:[%s1415_s15 + $0xc8] sm:$0xff]  ;;  %v331_v16 = vld [vmem:[%s1415_s15 + $0x30] sm:$0xff]  ;;  %s323_s25 = scalar_lea.vmem %s1635_s5, %s1452_s27  ;;  %s319_s28 = scalar_lea.vmem %s1634_s4, %s1452_s27 }
  0x40   : > { %390 = vmatpush.msra.mxu1 %v958_v7  ;;  %v953_v17 = vld [vmem:[%s1415_s15 + $0xc0] sm:$0xff]  ;;  %v330_v18 = vld [vmem:[%s1415_s15 + $0x28] sm:$0xff]  ;;  %v952_v19 = vld [vmem:[%s1415_s15 + $0xb8] sm:$0xff] }
  0x41   : > { %348 = vmatpush.msra.mxu0 %v337_v3  ;;  %v329_v20 = vld [vmem:[%s1415_s15 + $0x20] sm:$0xff]  ;;  %v951_v21 = vld [vmem:[%s1415_s15 + $0xb0] sm:$0xff]  ;;  %v328_v22 = vld [vmem:[%s1415_s15 + $0x18] sm:$0xff] }
  0x42   : > { %391 = vmatpush.msra.mxu1 %v957_v10  ;;  %v950_v23 = vld [vmem:[%s1415_s15 + $0xa8] sm:$0xff]  ;;  %v327_v24 = vld [vmem:[%s1415_s15 + $0x10] sm:$0xff]  ;;  %v325_v26 = vld [vmem:[%s1415_s15] sm:$0xff] }
  0x43   : > { %349 = vmatpush.msra.mxu0 %v336_v5  ;;  %v326_v25 = vld [vmem:[%s1415_s15 + $0x8] sm:$0xff]  ;;  %v324_v27 = vld [vmem:[%s311_s18] sm:$0xff]  ;;  %v948_v29 = vld [vmem:[%s1415_s15 + $0x98] sm:$0xff] }
  0x44   : > { %392 = vmatpush.msra.mxu1 %v956_v11  ;;  %v949_v28 = vld [vmem:[%s1415_s15 + $0xa0] sm:$0xff]  ;;  %v947_v30 = vld [vmem:[%s1415_s15 + $0x90] sm:$0xff]  ;;  %v946_v31 = vld [vmem:[%s1415_s15 + $0x88] sm:$0xff] }
  0x45   : > { %350 = vmatpush.msra.mxu0 %v335_v8  ;;  %v945_v32 = vld [vmem:[%s1415_s15 + $0x80] sm:$0xff]  ;;  %v977_v33 = vld [vmem:[%s1415_s15 + $0x178] sm:$0xff]  ;;  %v976_v34 = vld [vmem:[%s1415_s15 + $0x170] sm:$0xff] }
  0x46   : > { %393 = vmatpush.msra.mxu1 %v955_v13  ;;  %431 = vmatpush.msra.mxu2 %v977_v33  ;;  %v975_v35 = vld [vmem:[%s1415_s15 + $0x168] sm:$0xff]  ;;  %v974_v36 = vld [vmem:[%s1415_s15 + $0x160] sm:$0xff]  ;;  %v973_v37 = vld [vmem:[%s1415_s15 + $0x158] sm:$0xff] }
  0x47   : > { %351 = vmatpush.msra.mxu0 %v334_v9  ;;  %v972_v38 = vld [vmem:[%s1415_s15 + $0x150] sm:$0xff]  ;;  %v971_v39 = vld [vmem:[%s1415_s15 + $0x148] sm:$0xff]  ;;  %v970_v40 = vld [vmem:[%s1415_s15 + $0x140] sm:$0xff] }
  0x48   : > { %394 = vmatpush.msra.mxu1 %v954_v15  ;;  %432 = vmatpush.msra.mxu2 %v976_v34  ;;  %v969_v41 = vld [vmem:[%s1415_s15 + $0x138] sm:$0xff]  ;;  %v968_v42 = vld [vmem:[%s1415_s15 + $0x130] sm:$0xff]  ;;  %v967_v43 = vld [vmem:[%s1415_s15 + $0x128] sm:$0xff] }
  0x49   : > { %352 = vmatpush.msra.mxu0 %v333_v12  ;;  %v1155_v44 = vld [vmem:[%s1421_s6] ss:$0 sm:$0xff]  ;;  %v965_v49 = vld [vmem:[%s1415_s15 + $0x118] sm:$0xff]  ;;  %v964_v50 = vld [vmem:[%s1415_s15 + $0x110] sm:$0xff] }
  0x4a   : > { %395 = vmatpush.msra.mxu1 %v953_v17  ;;  %433 = vmatpush.msra.mxu2 %v975_v35  ;;  %v966_v48 = vld [vmem:[%s1415_s15 + $0x120] sm:$0xff]  ;;  %v963_v51 = vld [vmem:[%s1415_s15 + $0x108] sm:$0xff]  ;;  %v994_v53 = vld [vmem:[%s1415_s15 + $0x1f8] sm:$0xff] }
  0x4b   : > { %353 = vmatpush.msra.mxu0 %v332_v14  ;;  %v962_v52 = vld [vmem:[%s1415_s15 + $0x100] sm:$0xff]  ;;  %v993_v54 = vld [vmem:[%s1415_s15 + $0x1f0] sm:$0xff]  ;;  %474 = vmatpush.msra.mxu3 %v994_v53  ;;  %v992_v55 = vld [vmem:[%s1415_s15 + $0x1e8] sm:$0xff] }
  0x4c   : > { %396 = vmatpush.msra.mxu1 %v952_v19  ;;  %434 = vmatpush.msra.mxu2 %v974_v36  ;;  %v991_v56 = vld [vmem:[%s1415_s15 + $0x1e0] sm:$0xff]  ;;  %v990_v57 = vld [vmem:[%s1415_s15 + $0x1d8] sm:$0xff]  ;;  %v989_v58 = vld [vmem:[%s1415_s15 + $0x1d0] sm:$0xff] }
  0x4d   : > { %354 = vmatpush.msra.mxu0 %v331_v16  ;;  %475 = vmatpush.msra.mxu3 %v993_v54  ;;  %v988_v59 = vld [vmem:[%s1415_s15 + $0x1c8] sm:$0xff]  ;;  %v987_v60 = vld [vmem:[%s1415_s15 + $0x1c0] sm:$0xff]  ;;  %v986_v61 = vld [vmem:[%s1415_s15 + $0x1b8] sm:$0xff] }
  0x4e   : > { %397 = vmatpush.msra.mxu1 %v951_v21  ;;  %435 = vmatpush.msra.mxu2 %v973_v37  ;;  %v985_v62 = vld [vmem:[%s1415_s15 + $0x1b0] sm:$0xff]  ;;  %v984_v63 = vld [vmem:[%s1415_s15 + $0x1a8] sm:$0xff]  ;;  %v983_v4 = vld [vmem:[%s1415_s15 + $0x1a0] sm:$0xff] }
  0x4f   : > { %355 = vmatpush.msra.mxu0 %v330_v18  ;;  %476 = vmatpush.msra.mxu3 %v992_v55  ;;  %v1156_v0 = vld [vmem:[%s1421_s6 + $0x1] ss:$0 sm:$0xff]  ;;  %v982_v5 = vld [vmem:[%s1415_s15 + $0x198] sm:$0xff]  ;;  %v981_v6 = vld [vmem:[%s1415_s15 + $0x190] sm:$0xff] }
  0x50   : > { %398 = vmatpush.msra.mxu1 %v950_v23  ;;  %436 = vmatpush.msra.mxu2 %v972_v38  ;;  %v980_v7 = vld [vmem:[%s1415_s15 + $0x188] sm:$0xff]  ;;  %v979_v8 = vld [vmem:[%s1415_s15 + $0x180] sm:$0xff]  ;;  %v1011_v9 = vld [vmem:[%s1415_s15 + $0x278] sm:$0xff] }
  0x51   : > { %356 = vmatpush.msra.mxu0 %v329_v20  ;;  %477 = vmatpush.msra.mxu3 %v991_v56  ;;  %v1010_v10 = vld [vmem:[%s1415_s15 + $0x270] sm:$0xff]  ;;  %v1009_v11 = vld [vmem:[%s1415_s15 + $0x268] sm:$0xff]  ;;  %v1008_v12 = vld [vmem:[%s1415_s15 + $0x260] sm:$0xff] }
  0x52   : > { %399 = vmatpush.msra.mxu1 %v949_v28  ;;  %437 = vmatpush.msra.mxu2 %v971_v39  ;;  %v1007_v13 = vld [vmem:[%s1415_s15 + $0x258] sm:$0xff]  ;;  %v1006_v14 = vld [vmem:[%s1415_s15 + $0x250] sm:$0xff]  ;;  %v1005_v15 = vld [vmem:[%s1415_s15 + $0x248] sm:$0xff] }
  0x53   : > { %357 = vmatpush.msra.mxu0 %v328_v22  ;;  %478 = vmatpush.msra.mxu3 %v990_v57  ;;  %v1004_v16 = vld [vmem:[%s1415_s15 + $0x240] sm:$0xff]  ;;  %v1003_v17 = vld [vmem:[%s1415_s15 + $0x238] sm:$0xff]  ;;  %v1002_v18 = vld [vmem:[%s1415_s15 + $0x230] sm:$0xff] }
  0x54   : > { %400 = vmatpush.msra.mxu1 %v948_v29  ;;  %438 = vmatpush.msra.mxu2 %v970_v40  ;;  %v1001_v19 = vld [vmem:[%s1415_s15 + $0x228] sm:$0xff]  ;;  %v1000_v21 = vld [vmem:[%s1415_s15 + $0x220] sm:$0xff]  ;;  %v999_v23 = vld [vmem:[%s1415_s15 + $0x218] sm:$0xff] }
  0x55   : > { %358 = vmatpush.msra.mxu0 %v327_v24  ;;  %479 = vmatpush.msra.mxu3 %v989_v58  ;;  %v1157_v20 = vld [vmem:[%s1421_s6 + $0x2] ss:$0 sm:$0xff]  ;;  %v1080_v28 = vld [vmem:[%s1415_s15 + $0x478] sm:$0xff]  ;;  %v1075_v34 = vld [vmem:[%s1415_s15 + $0x450] sm:$0xff] }
  0x56   : > { %401 = vmatpush.msra.mxu1 %v947_v30  ;;  %439 = vmatpush.msra.mxu2 %v969_v41  ;;  %v1079_v30 = vld [vmem:[%s1415_s15 + $0x470] sm:$0xff]  ;;  %v1076_v33 = vld [vmem:[%s1415_s15 + $0x458] sm:$0xff]  ;;  %v1074_v35 = vld [vmem:[%s1415_s15 + $0x448] sm:$0xff] }
  0x57   : > { %359 = vmatpush.msra.mxu0 %v326_v25  ;;  %480 = vmatpush.msra.mxu3 %v988_v59  ;;  %v998_v25 = vld [vmem:[%s1415_s15 + $0x210] sm:$0xff]  ;;  %v1073_v36 = vld [vmem:[%s1415_s15 + $0x440] sm:$0xff]  ;;  %v1072_v37 = vld [vmem:[%s1415_s15 + $0x438] sm:$0xff] }
  0x58   : > { %402 = vmatpush.msra.mxu1 %v946_v31  ;;  %440 = vmatpush.msra.mxu2 %v968_v42  ;;  %v1078_v31 = vld [vmem:[%s1415_s15 + $0x468] sm:$0xff]  ;;  %v1071_v38 = vld [vmem:[%s1415_s15 + $0x430] sm:$0xff]  ;;  %v1069_v40 = vld [vmem:[%s1415_s15 + $0x420] sm:$0xff] }
  0x59   : > { %360 = vmatpush.msra.mxu0 %v325_v26  ;;  %481 = vmatpush.msra.mxu3 %v987_v60  ;;  %v997_v26 = vld [vmem:[%s1415_s15 + $0x208] sm:$0xff]  ;;  %v1068_v41 = vld [vmem:[%s1415_s15 + $0x418] sm:$0xff]  ;;  %v1067_v42 = vld [vmem:[%s1415_s15 + $0x410] sm:$0xff] }
  0x5a   : > { %361 = vmatmul.f32.vlgmr.msra.gmra.mxu0 %v324_v27  ;;  %403 = vmatpush.msra.mxu1 %v945_v32  ;;  %v996_v27 = vld [vmem:[%s1415_s15 + $0x200] sm:$0xff]  ;;  %v1070_v39 = vld [vmem:[%s1415_s15 + $0x428] sm:$0xff]  ;;  %v1020_v55 = vld [vmem:[%s1415_s15 + $0x2b8] sm:$0xff] }
  0x5b   : > { %441 = vmatpush.msra.mxu2 %v967_v43  ;;  %482 = vmatpush.msra.mxu3 %v986_v61  ;;  %v1077_v32 = vld [vmem:[%s1415_s15 + $0x460] sm:$0xff]  ;;  %v1066_v43 = vld [vmem:[%s1415_s15 + $0x408] sm:$0xff]  ;;  %v1019_v57 = vld [vmem:[%s1415_s15 + $0x2b0] sm:$0xff] }
  0x5c   : > { %518 = vmatpush.msrb.mxu0 %v1011_v9  ;;  %v1021_v53 = vld [vmem:[%s1415_s15 + $0x2c0] sm:$0xff]  ;;  %v1018_v58 = vld [vmem:[%s1415_s15 + $0x2a8] sm:$0xff]  ;;  %v1016_v60 = vld [vmem:[%s1415_s15 + $0x298] sm:$0xff] }
  0x5d   : > { %442 = vmatpush.msra.mxu2 %v966_v48  ;;  %483 = vmatpush.msra.mxu3 %v985_v62  ;;  %v1025_v48 = vld [vmem:[%s1415_s15 + $0x2e0] sm:$0xff]  ;;  %v1015_v62 = vld [vmem:[%s1415_s15 + $0x290] sm:$0xff]  ;;  %v1089_v9 = vld [vmem:[%s1415_s15 + $0x4b8] sm:$0xff] }
  0x5e   : > { %519 = vmatpush.msrb.mxu0 %v1010_v10  ;;  %v1017_v59 = vld [vmem:[%s1415_s15 + $0x2a0] sm:$0xff]  ;;  %v1088_v10 = vld [vmem:[%s1415_s15 + $0x4b0] sm:$0xff] }
  0x5f   : > { %443 = vmatpush.msra.mxu2 %v965_v49  ;;  %484 = vmatpush.msra.mxu3 %v984_v63  ;;  %v1024_v49 = vld [vmem:[%s1415_s15 + $0x2d8] sm:$0xff]  ;;  %v1014_v63 = vld [vmem:[%s1415_s15 + $0x288] sm:$0xff] }
  0x60   : > { %520 = vmatpush.msrb.mxu0 %v1009_v11  ;;  %v1087_v11 = vld [vmem:[%s1415_s15 + $0x4a8] sm:$0xff] }
  0x61   : > { %444 = vmatpush.msra.mxu2 %v964_v50  ;;  %485 = vmatpush.msra.mxu3 %v983_v4  ;;  %v1023_v50 = vld [vmem:[%s1415_s15 + $0x2d0] sm:$0xff]  ;;  %v1094_v4 = vld [vmem:[%s1415_s15 + $0x4e0] sm:$0xff] }
  0x62   : > { %521 = vmatpush.msrb.mxu0 %v1008_v12  ;;  %v1086_v12 = vld [vmem:[%s1415_s15 + $0x4a0] sm:$0xff] }
  0x63   : > { %445 = vmatpush.msra.mxu2 %v963_v51  ;;  %486 = vmatpush.msra.mxu3 %v982_v5  ;;  %v1022_v51 = vld [vmem:[%s1415_s15 + $0x2c8] sm:$0xff]  ;;  %v1093_v5 = vld [vmem:[%s1415_s15 + $0x4d8] sm:$0xff] }
  0x64   : > { %522 = vmatpush.msrb.mxu0 %v1007_v13  ;;  %v1085_v13 = vld [vmem:[%s1415_s15 + $0x498] sm:$0xff] }
  0x65   : > { %446 = vmatpush.msra.mxu2 %v962_v52  ;;  %487 = vmatpush.msra.mxu3 %v981_v6  ;;  %v1158_v52 = vld [vmem:[%s1421_s6 + $0x3] ss:$0 sm:$0xff]  ;;  %v1092_v6 = vld [vmem:[%s1415_s15 + $0x4d0] sm:$0xff] }
  0x66   : > { %523 = vmatpush.msrb.mxu0 %v1006_v14  ;;  %v1084_v14 = vld [vmem:[%s1415_s15 + $0x490] sm:$0xff] }
  0x67   : > { %488 = vmatpush.msra.mxu3 %v980_v7  ;;  %v1091_v7 = vld [vmem:[%s1415_s15 + $0x4c8] sm:$0xff] }
  0x68   : > { %524 = vmatpush.msrb.mxu0 %v1005_v15  ;;  %v1083_v15 = vld [vmem:[%s1415_s15 + $0x488] sm:$0xff] }
  0x69   : > { %489 = vmatpush.msra.mxu3 %v979_v8  ;;  %v1090_v8 = vld [vmem:[%s1415_s15 + $0x4c0] sm:$0xff] }
  0x6a   : > { %525 = vmatpush.msrb.mxu0 %v1004_v16  ;;  %v1082_v16 = vld [vmem:[%s1415_s15 + $0x480] sm:$0xff] }
  0x6c   : > { %526 = vmatpush.msrb.mxu0 %v1003_v17  ;;  %v1045_v17 = vld [vmem:[%s1415_s15 + $0x378] sm:$0xff] }
  0x6d   : > { %604 = vmatpush.msrb.mxu2 %v1045_v17 }
  0x6e   : > { %527 = vmatpush.msrb.mxu0 %v1002_v18  ;;  %v1044_v18 = vld [vmem:[%s1415_s15 + $0x370] sm:$0xff] }
  0x6f   : > { %605 = vmatpush.msrb.mxu2 %v1044_v18 }
  0x70   : > { %528 = vmatpush.msrb.mxu0 %v1001_v19  ;;  %v1043_v19 = vld [vmem:[%s1415_s15 + $0x368] sm:$0xff] }
  0x71   : > { %606 = vmatpush.msrb.mxu2 %v1043_v19 }
  0x72   : > { %529 = vmatpush.msrb.mxu0 %v1000_v21  ;;  %v1041_v21 = vld [vmem:[%s1415_s15 + $0x358] sm:$0xff] }
  0x74   : > { %530 = vmatpush.msrb.mxu0 %v999_v23  ;;  %v1039_v23 = vld [vmem:[%s1415_s15 + $0x348] sm:$0xff] }
  0x76   : > { %531 = vmatpush.msrb.mxu0 %v998_v25  ;;  %v1038_v25 = vld [vmem:[%s1415_s15 + $0x340] sm:$0xff] }
  0x78   : > { %532 = vmatpush.msrb.mxu0 %v997_v26 }
  0x7a   : > { %533 = vmatpush.msrb.mxu0 %v996_v27  ;;  %v1037_v27 = vld [vmem:[%s1415_s15 + $0x338] sm:$0xff] }
  0x7c   : > { %709 = vmatpush.msra.mxu0 %v1080_v28 }
  0x7e   : > { %710 = vmatpush.msra.mxu0 %v1079_v30  ;;  %v1035_v30 = vld [vmem:[%s1415_s15 + $0x328] sm:$0xff] }
  0x80   : > { %711 = vmatpush.msra.mxu0 %v1078_v31  ;;  %v1160_v31 = vld [vmem:[%s1421_s6 + $0x8] ss:$0 sm:$0xff] }
  0x82   : > { %712 = vmatpush.msra.mxu0 %v1077_v32 }
  0x84   : > { %713 = vmatpush.msra.mxu0 %v1076_v33 }
  0x86   : > { %714 = vmatpush.msra.mxu0 %v1075_v34 }
  0x88   : > { %715 = vmatpush.msra.mxu0 %v1074_v35 }
  0x8a   : > { %716 = vmatpush.msra.mxu0 %v1073_v36  ;;  %v1034_v36 = vld [vmem:[%s1415_s15 + $0x320] sm:$0xff] }
  0x8c   : > { %717 = vmatpush.msra.mxu0 %v1072_v37  ;;  %v1033_v37 = vld [vmem:[%s1415_s15 + $0x318] sm:$0xff] }
  0x8e   : > { %718 = vmatpush.msra.mxu0 %v1071_v38  ;;  %v1032_v38 = vld [vmem:[%s1415_s15 + $0x310] sm:$0xff] }
  0x90   : > { %719 = vmatpush.msra.mxu0 %v1070_v39  ;;  %v1031_v39 = vld [vmem:[%s1415_s15 + $0x308] sm:$0xff] }
  0x92   : > { %720 = vmatpush.msra.mxu0 %v1069_v40  ;;  %v1030_v40 = vld [vmem:[%s1415_s15 + $0x300] sm:$0xff] }
  0x94   : > { %721 = vmatpush.msra.mxu0 %v1068_v41  ;;  %v1062_v41 = vld [vmem:[%s1415_s15 + $0x3f8] sm:$0xff] }
  0x95   : > { %647 = vmatpush.msrb.mxu3 %v1062_v41 }
  0x96   : > { %722 = vmatpush.msra.mxu0 %v1067_v42  ;;  %v1061_v42 = vld [vmem:[%s1415_s15 + $0x3f0] sm:$0xff] }
  0x97   : > { %648 = vmatpush.msrb.mxu3 %v1061_v42 }
  0x98   : > { %723 = vmatpush.msra.mxu0 %v1066_v43  ;;  %v1060_v43 = vld [vmem:[%s1415_s15 + $0x3e8] sm:$0xff] }
  0x99   : > { %649 = vmatpush.msrb.mxu3 %v1060_v43 }
  0xd7   : > { %v362_v45 = vpop.f32.mrf.mxu0 }
  0xd8   : > { %v363_v46 = vadd.f32 %v1155_v44, %v362_v45  ;;  %v1065_v44 = vld [vmem:[%s1415_s15 + $0x400] sm:$0xff]  ;;  %v1028_v45 = vld [vmem:[%s1415_s15 + $0x2f8] sm:$0xff] }
  0xd9   : > { %724 = vmatpush.msra.mxu0 %v1065_v44  ;;  %561 = vmatpush.msrb.mxu1 %v1028_v45  ;;  %v1059_v44 = vld [vmem:[%s1415_s15 + $0x3e0] sm:$0xff]  ;;  %v1058_v45 = vld [vmem:[%s1415_s15 + $0x3d8] sm:$0xff] }
  0xda   : > { %1165 = vtanh.f32 %v363_v46  ;;  %v1027_v46 = vld [vmem:[%s1415_s15 + $0x2f0] sm:$0xff]  ;;  %650 = vmatpush.msrb.mxu3 %v1059_v44 }
  0xdb   : > { %562 = vmatpush.msrb.mxu1 %v1027_v46  ;;  %v1057_v46 = vld [vmem:[%s1415_s15 + $0x3d0] sm:$0xff] }
  0xdc   : > { %651 = vmatpush.msrb.mxu3 %v1058_v45 }
  0xde   : > { %652 = vmatpush.msrb.mxu3 %v1057_v46 }
  0xe0   : > { %v1166_v47 = vpop.eup %1165 }
  0xe1   : > { %404 = vmatmul.f32.vlgmr.msra.gmra.mxu1 %v1166_v47  ;;  %v1026_v47 = vld [vmem:[%s1415_s15 + $0x2e8] sm:$0xff] }
  0xe2   : > { %563 = vmatpush.msrb.mxu1 %v1026_v47  ;;  %v1056_v47 = vld [vmem:[%s1415_s15 + $0x3c8] sm:$0xff] }
  0xe3   : > { %653 = vmatpush.msrb.mxu3 %v1056_v47 }
  0xe4   : > { %564 = vmatpush.msrb.mxu1 %v1025_v48  ;;  %v1161_v48 = vld [vmem:[%s1421_s6 + $0x5] ss:$0 sm:$0xff] }
  0xe6   : > { %565 = vmatpush.msrb.mxu1 %v1024_v49  ;;  %v1055_v49 = vld [vmem:[%s1415_s15 + $0x3c0] sm:$0xff] }
  0xe7   : > { %654 = vmatpush.msrb.mxu3 %v1055_v49 }
  0xe8   : > { %566 = vmatpush.msrb.mxu1 %v1023_v50 }
  0xea   : > { %567 = vmatpush.msrb.mxu1 %v1022_v51  ;;  %v1054_v51 = vld [vmem:[%s1415_s15 + $0x3b8] sm:$0xff] }
  0xeb   : > { %655 = vmatpush.msrb.mxu3 %v1054_v51 }
  0xec   : > { %568 = vmatpush.msrb.mxu1 %v1021_v53  ;;  %v1053_v53 = vld [vmem:[%s1415_s15 + $0x3b0] sm:$0xff] }
  0xed   : > { %656 = vmatpush.msrb.mxu3 %v1053_v53 }
  0xee   : > { %569 = vmatpush.msrb.mxu1 %v1020_v55  ;;  %v1162_v55 = vld [vmem:[%s1421_s6 + $0x9] ss:$0 sm:$0xff] }
  0xf0   : > { %570 = vmatpush.msrb.mxu1 %v1019_v57 }
  0xf2   : > { %571 = vmatpush.msrb.mxu1 %v1018_v58 }
  0xf4   : > { %572 = vmatpush.msrb.mxu1 %v1017_v59 }
  0xf6   : > { %573 = vmatpush.msrb.mxu1 %v1016_v60  ;;  %v1051_v60 = vld [vmem:[%s1415_s15 + $0x3a0] sm:$0xff] }
  0xf8   : > { %574 = vmatpush.msrb.mxu1 %v1015_v62  ;;  %v1049_v62 = vld [vmem:[%s1415_s15 + $0x390] sm:$0xff] }
  0xfa   : > { %575 = vmatpush.msrb.mxu1 %v1014_v63  ;;  %v1048_v63 = vld [vmem:[%s1415_s15 + $0x388] sm:$0xff] }
 0x15e   : > { %v405_v1 = vpop.f32.mrf.mxu1 }
 0x15f   : > { %v406_v2 = vadd.f32 %v1156_v0, %v405_v1  ;;  %v1013_v0 = vld [vmem:[%s1415_s15 + $0x280] sm:$0xff]  ;;  %v1097_v1 = vld [vmem:[%s1415_s15 + $0x4f8] sm:$0xff] }
 0x160   : > { %576 = vmatpush.msrb.mxu1 %v1013_v0  ;;  %v1047_v0 = vld [vmem:[%s1415_s15 + $0x380] sm:$0xff] }
 0x161   : > { %1167 = vtanh.f32 %v406_v2  ;;  %v1096_v2 = vld [vmem:[%s1415_s15 + $0x4f0] sm:$0xff] }
 0x162   : > { %752 = vmatpush.msra.mxu1 %v1097_v1  ;;  %v1163_v1 = vld [vmem:[%s1421_s6 + $0x6] ss:$0 sm:$0xff] }
 0x164   : > { %753 = vmatpush.msra.mxu1 %v1096_v2 }
 0x167   : > { %v1168_v3 = vpop.eup %1167 }
 0x168   : > { %447 = vmatmul.f32.vlgmr.msra.gmra.mxu2 %v1168_v3  ;;  %v1095_v3 = vld [vmem:[%s1415_s15 + $0x4e8] sm:$0xff] }
 0x169   : > { %754 = vmatpush.msra.mxu1 %v1095_v3 }
 0x16b   : > { %755 = vmatpush.msra.mxu1 %v1094_v4 }
 0x16d   : > { %756 = vmatpush.msra.mxu1 %v1093_v5  ;;  %v1164_v5 = vld [vmem:[%s1421_s6 + $0x7] ss:$0 sm:$0xff] }
 0x16f   : > { %757 = vmatpush.msra.mxu1 %v1092_v6 }
 0x171   : > { %758 = vmatpush.msra.mxu1 %v1091_v7 }
 0x173   : > { %759 = vmatpush.msra.mxu1 %v1090_v8 }
 0x175   : > { %760 = vmatpush.msra.mxu1 %v1089_v9 }
 0x177   : > { %761 = vmatpush.msra.mxu1 %v1088_v10 }
 0x179   : > { %762 = vmatpush.msra.mxu1 %v1087_v11 }
 0x17b   : > { %763 = vmatpush.msra.mxu1 %v1086_v12 }
 0x17d   : > { %764 = vmatpush.msra.mxu1 %v1085_v13 }
 0x17f   : > { %765 = vmatpush.msra.mxu1 %v1084_v14 }
 0x181   : > { %766 = vmatpush.msra.mxu1 %v1083_v15 }
 0x183   : > { %767 = vmatpush.msra.mxu1 %v1082_v16 }
 0x1eb   : > { %v448_v22 = vpop.f32.mrf.mxu2 }
 0x1ec   : > { %v449_v24 = vadd.f32 %v1157_v20, %v448_v22  ;;  %v1042_v20 = vld [vmem:[%s1415_s15 + $0x360] sm:$0xff]  ;;  %v1040_v22 = vld [vmem:[%s1415_s15 + $0x350] sm:$0xff] }
 0x1ed   : > { %607 = vmatpush.msrb.mxu2 %v1042_v20 }
 0x1ee   : > { %1169 = vtanh.f32 %v449_v24  ;;  %v1159_v24 = vld [vmem:[%s1421_s6 + $0x4] ss:$0 sm:$0xff] }
 0x1ef   : > { %608 = vmatpush.msrb.mxu2 %v1041_v21 }
 0x1f1   : > { %609 = vmatpush.msrb.mxu2 %v1040_v22 }
 0x1f3   : > { %610 = vmatpush.msrb.mxu2 %v1039_v23 }
 0x1f4   : > { %v1170_v29 = vpop.eup %1169 }
 0x1f5   : > { %490 = vmatmul.f32.vlgmr.msra.gmra.mxu3 %v1170_v29  ;;  %611 = vmatpush.msrb.mxu2 %v1038_v25  ;;  %v1036_v29 = vld [vmem:[%s1415_s15 + $0x330] sm:$0xff] }
 0x1f7   : > { %612 = vmatpush.msrb.mxu2 %v1037_v27 }
 0x1f9   : > { %613 = vmatpush.msrb.mxu2 %v1036_v29 }
 0x1fb   : > { %614 = vmatpush.msrb.mxu2 %v1035_v30 }
 0x1fd   : > { %615 = vmatpush.msrb.mxu2 %v1034_v36 }
 0x1ff   : > { %616 = vmatpush.msrb.mxu2 %v1033_v37 }
 0x201   : > { %617 = vmatpush.msrb.mxu2 %v1032_v38 }
 0x203   : > { %618 = vmatpush.msrb.mxu2 %v1031_v39 }
 0x205   : > { %619 = vmatpush.msrb.mxu2 %v1030_v40 }
 0x278   : > { %v491_v54 = vpop.f32.mrf.mxu3 }
 0x279   : > { %v492_v56 = vadd.f32 %v1158_v52, %v491_v54  ;;  %v1052_v54 = vld [vmem:[%s1415_s15 + $0x3a8] sm:$0xff] }
 0x27a   : > { %657 = vmatpush.msrb.mxu3 %v1052_v54 }
 0x27b   : > { %1171 = vtanh.f32 %v492_v56 }
 0x27c   : > { %658 = vmatpush.msrb.mxu3 %v1051_v60 }
 0x281   : > { %v1172_v61 = vpop.eup %1171 }
 0x282   : > { %495 = vst [vmem:[%s315_s12] sm:$0xff] %v1172_v61  ;;  %534 = vmatmul.f32.vlgmr.msrb.gmra.mxu0 %v1172_v61 }
 0x28a   : > { %725 = vmatmul.f32.vlgmr.msra.gmra.mxu0 %v1172_v61  ;;  %v1050_v61 = vld [vmem:[%s1415_s15 + $0x398] sm:$0xff] }
 0x28b   : > { %659 = vmatpush.msrb.mxu3 %v1050_v61 }
 0x28d   : > { %660 = vmatpush.msrb.mxu3 %v1049_v62 }
 0x28f   : > { %661 = vmatpush.msrb.mxu3 %v1048_v63 }
 0x291   : > { %662 = vmatpush.msrb.mxu3 %v1047_v0 }
 0x2ff   : > { %v535_v26 = vpop.f32.mrf.mxu0 }
 0x300   : > { %v536_v28 = vadd.f32 %v1159_v24, %v535_v26 }
 0x302   : > { %1173 = vtanh.f32 %v536_v28 }
 0x307   : > { %v726_v32 = vpop.f32.mrf.mxu0 }
 0x308   : > { %v1174_v33 = vpop.eup %1173  ;;  %v727_v34 = vadd.f32 %v1160_v31, %v726_v32 }
 0x309   : > { %577 = vmatmul.f32.vlgmr.msrb.gmra.mxu1 %v1174_v33 }
 0x30a   : > { %1175 = vtanh.f32 %v727_v34 }
 0x310   : > { %v1176_v35 = vpop.eup %1175 }
 0x311   : > { %768 = vmatmul.f32.vlgmr.msra.gmra.mxu1 %v1176_v35 }
 0x386   : > { %v578_v50 = vpop.f32.mrf.mxu1 }
 0x387   : > { %v579_v52 = vadd.f32 %v1161_v48, %v578_v50 }
 0x389   : > { %1177 = vtanh.f32 %v579_v52 }
 0x38e   : > { %v769_v56 = vpop.f32.mrf.mxu1 }
 0x38f   : > { %v1178_v57 = vpop.eup %1177  ;;  %v770_v58 = vadd.f32 %v1162_v55, %v769_v56 }
 0x390   : > { %620 = vmatmul.f32.vlgmr.msrb.gmra.mxu2 %v1178_v57 }
 0x391   : > { %1179 = vtanh.f32 %v770_v58 }
 0x397   : > { %v1180_v59 = vpop.eup %1179 }
 0x398   : > { %773 = vst [vmem:[%s323_s25] sm:$0xff] %v1180_v59 }
 0x413   : > { %v621_v2 = vpop.f32.mrf.mxu2 }
 0x414   : > { %v622_v3 = vadd.f32 %v1163_v1, %v621_v2 }
 0x416   : > { %1181 = vtanh.f32 %v622_v3 }
 0x41c   : > { %v1182_v4 = vpop.eup %1181 }
 0x41d   : > { %663 = vmatmul.f32.vlgmr.msrb.gmra.mxu3 %v1182_v4 }
 0x4a0   : > { %v664_v6 = vpop.f32.mrf.mxu3 }
 0x4a1   : > { %v665_v7 = vadd.f32 %v1164_v5, %v664_v6 }
 0x4a3   : > { %v1064_v8 = vmul.f32 -1.442695, %v665_v7 }
 0x4a5   : > { %1183 = vpow2.f32 %v1064_v8 }
 0x4ab   : > { %v1184_v9 = vpop.eup %1183 }
 0x4ac   : > { %v670_v10 = vadd.f32 1.0, %v1184_v9 }
 0x4ae   : > { %1185 = vrcp.f32 %v670_v10  ;;  %v682_v14 = vand.u32 2147483648, %v670_v10  ;;  %v680_v16 = vand.u32 2147483647, %v670_v10  ;;  %vm676_vm1 = vweird.f32 %v670_v10 }
 0x4b0   : > { %v683_v18 = vor.u32 1.1754944e-38, %v682_v14  ;;  %vm681_vm3 = vcmp.eq.f32.partialorder %v680_v16, 8.507059e+37 }
 0x4b4   : > { %v1186_v11 = vpop.eup %1185 }
 0x4b5   : > { %v672_v12 = vmul.f32 %v1186_v11, %v670_v10  ;;  %vm677_vm0 = vweird.f32 %v1186_v11 }
 0x4b6   : > { %vm678_vm2 = vmor %vm676_vm1, %vm677_vm0 }
 0x4b7   : > { %v673_v13 = vsub.f32 1.0, %v672_v12 }
 0x4b9   : > { %v674_v15 = vmul.f32 %v1186_v11, %v673_v13 }
 0x4bb   : > { %v675_v17 = vadd.f32 %v1186_v11, %v674_v15 }
 0x4bd   : > { %v679_v19 = vsel %vm678_vm2, %v1186_v11, %v675_v17 }
 0x4be   : > { %v684_v20 = vsel %vm681_vm3, %v683_v18, %v679_v19 }
 0x4bf   : > { %686 = vst [vmem:[%s319_s28] sm:$0xff] %v684_v20 }
 0x4c0 PF: > { %p19_p8 = scmp.ge.s32.totalorder %s1343_s23, 4   ;;  %s1639_s18 = smov %s1277_s19 }
 0x4c1   : > { %s1640_s19 = smov %s1281_s20  ;;  %s1641_s20 = smov %s1353_s26 }
 0x4c2   : > { %s1642_s21 = smov %s1343_s23  ;;  %21 = sbr.rel (!%p19_p8) target bundleno = 5 (0x5), region = 130 }
 0x4c7   :  { %821 = vsyncpa [#allocation3], 1 }
 0x4c8   :  { %823 = vsyncpa [#allocation3 + $0x1], 1 }
 0x4c9   :  { %824 = vsyncpa [#allocation5], 1 }
 0x4ca   :  { %826 = vsyncpa [#allocation5 + $0x1], 1 }

</bundles_post_ra>
